<compile_context>
chip_gen: v7x
topology: tpu7x:2x2x1
jax: 0.10.0
libtpu: 0.0.40
codegen_flags: <defaults>
</compile_context>

<pallas_src>
import functools

import jax
import jax.numpy as jnp
from jax.experimental import pallas as pl
from jax.experimental.pallas import tpu as pltpu


def _round_up(x, m):
    return ((x + m - 1) // m) * m


# --------------------------------------------------------------------------
# Kernel: one (tm, tn) output tile of y = LeakyReLU(x @ w + b).
# Grid = (G, Mi, Nj, Kk); K (axis 3) is the reduction, accumulated in an f32
# VMEM scratch tile; the output tile is written once in the last-K epilogue.
# --------------------------------------------------------------------------
def _linear_lrelu_kernel(x_ref, w_ref, b_ref, o_ref, acc_ref, *, slope):
    k = pl.program_id(3)

    @pl.when(k == 0)
    def _():
        acc_ref[...] = jnp.zeros_like(acc_ref)

    acc_ref[...] += jnp.dot(
        x_ref[...], w_ref[...], preferred_element_type=jnp.float32
    )

    @pl.when(k == pl.num_programs(3) - 1)
    def _():
        y = acc_ref[...] + b_ref[...]                    # bias broadcast (f32)
        o_ref[...] = jnp.where(y > 0, y, slope * y).astype(o_ref.dtype)


# --------------------------------------------------------------------------
# Generation-aware tile selection.
# --------------------------------------------------------------------------
def _vmem_info():
    try:
        cap = int(pltpu.get_tpu_info().vmem_capacity_bytes)
    except Exception:
        cap = 64 << 20  # conservative default (v7x-sized)
    budget = max(int(cap * 0.68), 24 << 20)
    # Small-VMEM generation (v7x) has 2 TensorCores per chip: prefer >= 2
    # N-blocks so the 'parallel' grid axes can shard across both cores.
    n_par = 2 if cap <= (64 << 20) else 1
    return budget, n_par, cap


def _choose_tiles(M, K, N, in_bytes, out_bytes, budget, n_par):
    tm = M                       # full batch: weights stream exactly once
    tk = K                       # full K when it fits (no K padding / pl.when)
    if n_par >= 2 and N >= 256:
        tn = _round_up(-(-N // n_par), 128)
    else:
        tn = N

    def est(tm_, tk_, tn_):
        return (in_bytes * 2 * (tm_ * tk_ + tk_ * tn_)   # double-buffered x, w
                + 4 * tm_ * tn_                          # f32 scratch acc
                + out_bytes * 2 * tm_ * tn_              # double-buffered out
                + 4 * 2 * tn_)                           # bias

    while est(tm, tk, tn) > budget and tk > 1024:
        tk = _round_up(tk // 2, 128)
    while est(tm, tk, tn) > budget and tn > 256:
        tn = _round_up(tn // 2, 128)
    while est(tm, tk, tn) > budget and tm > 256:
        tm = _round_up(-(-tm // 2), 8)
    while est(tm, tk, tn) > budget and tk > 256:
        tk = _round_up(tk // 2, 128)
    return tm, tk, tn, est(tm, tk, tn)


# --------------------------------------------------------------------------
# Wrapper: batched fused linear + LeakyReLU.
# --------------------------------------------------------------------------
def fused_linear_lrelu(x, w, b, *, slope=0.2, out_dtype=None):
    """y[g] = LeakyReLU(x[g] @ w[g] + b[g], slope).

    x: (G, M, K), w: (G, K, N), b: (G, N).  Accumulation is float32; output
    dtype is `out_dtype` (default float32).  Pass bf16 x/w (pre-cast once in
    prepare_mlp_g_params) to halve the dominant weight HBM traffic — this is
    worthwhile on v5e as well as v6e/v7x since all are bandwidth-bound here.
    """
    G, M, K = x.shape
    Gw, Kw, N = w.shape
    assert G == Gw and K == Kw and b.shape == (G, N)
    out_dtype = jnp.dtype(out_dtype or jnp.float32)

    if x.dtype != w.dtype:
        x = x.astype(w.dtype)
    in_bytes = jnp.dtype(x.dtype).itemsize
    out_bytes = out_dtype.itemsize

    budget, n_par, vmem_cap = _vmem_info()
    tm, tk, tn, est = _choose_tiles(M, K, N, in_bytes, out_bytes, budget, n_par)

    Mp = M if tm == M else _round_up(M, tm)
    Kp = K if tk == K else _round_up(K, tk)
    Np = N if tn == N else _round_up(N, tn)

    if (Mp, Kp) != (M, K):
        x = jnp.pad(x, ((0, 0), (0, Mp - M), (0, Kp - K)))
    if (Kp, Np) != (K, N):
        w = jnp.pad(w, ((0, 0), (0, Kp - K), (0, Np - N)))
    b = b.astype(jnp.float32)
    if Np != N:
        b = jnp.pad(b, ((0, 0), (0, Np - N)))
    b3 = b.reshape(G, 1, Np)

    grid = (G, Mp // tm, Np // tn, Kp // tk)

    vmem_limit = int(min(vmem_cap - (4 << 20), max(est + (8 << 20), 32 << 20)))

    kernel = functools.partial(_linear_lrelu_kernel, slope=slope)

    out = pl.pallas_call(
        kernel,
        out_shape=jax.ShapeDtypeStruct((G, Mp, Np), out_dtype),
        grid_spec=pltpu.PrefetchScalarGridSpec(
            num_scalar_prefetch=0,
            grid=grid,
            in_specs=[
                pl.BlockSpec((None, tm, tk), lambda g, i, j, k: (g, i, k)),
                pl.BlockSpec((None, tk, tn), lambda g, i, j, k: (g, k, j)),
                pl.BlockSpec((None, 1, tn), lambda g, i, j, k: (g, 0, j)),
            ],
            out_specs=pl.BlockSpec((None, tm, tn), lambda g, i, j, k: (g, i, j)),
            scratch_shapes=[pltpu.VMEM((tm, tn), jnp.float32)],
        ),
        compiler_params=pltpu.CompilerParams(
            dimension_semantics=("parallel", "parallel", "parallel", "arbitrary"),
            vmem_limit_bytes=vmem_limit,
        ),
    )(x, w, b3)

    if (Mp, Np) != (M, N):
        out = out[:, :M, :N]
    return out


# --------------------------------------------------------------------------
# MLP_g parameters and forward.
# --------------------------------------------------------------------------
def init_mlp_g_params(key, att_size, nz, ngh, res_size):
    """weights_init semantics: Linear weights ~ N(0, 0.02), biases = 0.
    Weights stored transposed: (in_features, out_features), float32."""
    k_shared, k1, k2 = jax.random.split(key, 3)
    in_dim = att_size + nz
    return {
        "shared_w": 0.02 * jax.random.normal(k_shared, (in_dim, ngh), jnp.float32),
        "shared_b": jnp.zeros((ngh,), jnp.float32),
        "fc1_w": 0.02 * jax.random.normal(k1, (ngh, res_size), jnp.float32),
        "fc1_b": jnp.zeros((res_size,), jnp.float32),
        "fc2_w": 0.02 * jax.random.normal(k2, (ngh, res_size), jnp.float32),
        "fc2_b": jnp.zeros((res_size,), jnp.float32),
    }


def prepare_mlp_g_params(params, compute_dtype=None):
    """One-time prep: cast weights to the compute dtype (bf16 recommended on
    v5e/v6e/v7x) and stack fc1/fc2 for the batched kernel, so no per-forward
    cast / pad / stack HBM passes are needed."""
    wdt = compute_dtype or jnp.float32
    return {
        "shared_w": params["shared_w"].astype(wdt),
        "shared_b": params["shared_b"].astype(jnp.float32),
        "fc_w": jnp.stack([params["fc1_w"], params["fc2_w"]], axis=0).astype(wdt),
        "fc_b": jnp.stack([params["fc1_b"], params["fc2_b"]], axis=0).astype(jnp.float32),
    }


def mlp_g_forward(prep, noise, atts, attu):
    """Pallas implementation of MLP_g.forward(noise, atts, attu).

    `prep` comes from prepare_mlp_g_params; its weight dtype sets the compute
    dtype (bf16 weights => bf16 activations with f32 MXU accumulation)."""
    B = noise.shape[0]
    cdt = prep["shared_w"].dtype

    # SharedFC runs once on the stacked [hs_in; hu_in] batch (shared weights
    # stream from HBM a single time).
    x = jnp.concatenate(
        [jnp.concatenate((noise, atts), axis=1),
         jnp.concatenate((noise, attu), axis=1)],
        axis=0,
    ).astype(cdt)

    h = fused_linear_lrelu(
        x[None], prep["shared_w"][None], prep["shared_b"][None], out_dtype=cdt
    )                                   # (1, 2B, ngh), bf16 when cdt is bf16
    h2 = h.reshape(2, B, h.shape[-1])   # free reshape: (2, B, ngh)

    # fc1/fc2 fused into one batched call; final output in float32 (module
    # semantics return float activations).
    out = fused_linear_lrelu(h2, prep["fc_w"], prep["fc_b"], out_dtype=jnp.float32)
    return out[0], out[1]


def _reference_forward(params, noise, atts, attu):
    """Pure-JAX reference matching torch semantics, for validation."""
    def lin(x, w, b):
        y = jnp.dot(x, w, precision=jax.lax.Precision.HIGHEST) + b
        return jnp.where(y > 0, y, 0.2 * y)

    hs = jnp.concatenate((noise, atts), axis=1)
    hu = jnp.concatenate((noise, attu), axis=1)
    hs = lin(hs, params["shared_w"], params["shared_b"])
    hu = lin(hu, params["shared_w"], params["shared_b"])
    hs = lin(hs, params["fc1_w"], params["fc1_b"])
    hu = lin(hu, params["fc2_w"], params["fc2_b"])
    return hs, hu


if __name__ == "__main__":
    # Small stand-ins for opt.attSize=312, nz=312, ngh=4096, resSize=2048,
    # batch=512.  ATT+NZ = 32 is deliberately not 128-aligned to exercise the
    # full-dim (unpadded) K-block path (mirrors in_dim=624 at production size).
    BATCH = 16
    ATT_SIZE = 20
    NZ = 12
    NGH = 256
    RES_SIZE = 128

    key = jax.random.PRNGKey(0)
    k_params, k_noise, k_atts, k_attu = jax.random.split(key, 4)

    params = init_mlp_g_params(k_params, ATT_SIZE, NZ, NGH, RES_SIZE)

    noise = jax.random.normal(k_noise, (BATCH, NZ), jnp.float32)
    atts = jax.random.normal(k_atts, (BATCH, ATT_SIZE), jnp.float32)
    attu = jax.random.normal(k_attu, (BATCH, ATT_SIZE), jnp.float32)

    hs_ref, hu_ref = _reference_forward(params, noise, atts, attu)

    fwd = jax.jit(mlp_g_forward)

    # f32 path.
    prep_f32 = prepare_mlp_g_params(params)
    hs, hu = fwd(prep_f32, noise, atts, attu)
    jax.block_until_ready((hs, hu))
    assert hs.shape == (BATCH, RES_SIZE) and hu.shape == (BATCH, RES_SIZE)
    assert jnp.allclose(hs, hs_ref, atol=2e-3, rtol=2e-3)
    assert jnp.allclose(hu, hu_ref, atol=2e-3, rtol=2e-3)

    # bf16 weight/activation path (recommended on v5e/v6e/v7x; f32 accumulate).
    prep_bf16 = prepare_mlp_g_params(params, jnp.bfloat16)
    hs_b, hu_b = fwd(prep_bf16, noise, atts, attu)
    jax.block_until_ready((hs_b, hu_b))
    assert jnp.allclose(hs_b, hs_ref, atol=2e-2, rtol=2e-1)
    assert jnp.allclose(hu_b, hu_ref, atol=2e-2, rtol=2e-1)

    print("KERNEL_OK")
</pallas_src>

<mosaic_0001>
module attributes {stable_mosaic.version = 11 : i64} {
  func.func @_linear_lrelu_kernel(%arg0: i32, %arg1: i32, %arg2: i32, %arg3: i32, %arg4: memref<1x32x32xf32, #tpu.memory_space<vmem>>, %arg5: memref<1x32x128xf32, #tpu.memory_space<vmem>>, %arg6: memref<1x1x128xf32, #tpu.memory_space<vmem>>, %arg7: memref<1x32x128xf32, #tpu.memory_space<vmem>>, %arg8: memref<32x128xf32, #tpu.memory_space<vmem>>) attributes {dimension_semantics = [#tpu.dimension_semantics<parallel>, #tpu.dimension_semantics<parallel>, #tpu.dimension_semantics<parallel>, #tpu.dimension_semantics<arbitrary>], iteration_bounds = array<i64: 1, 1, 2, 1>, scalar_prefetch = 0 : i64, scratch_operands = 1 : i64, tpu.core_type = #tpu.core_type<tc>, window_params = [{transform_indices = @transform_0, window_bounds = array<i64: 1, 32, 32>}, {transform_indices = @transform_1, window_bounds = array<i64: 1, 32, 128>}, {transform_indices = @transform_2, window_bounds = array<i64: 1, 1, 128>}, {transform_indices = @transform_3, window_bounds = array<i64: 1, 32, 128>}]} {
    %c0_i32 = arith.constant 0 : i32
    %0 = arith.cmpi eq, %arg3, %c0_i32 : i32
    %1 = arith.extui %0 : i1 to i32
    %c0_i32_0 = arith.constant 0 : i32
    %2 = arith.cmpi ne, %1, %c0_i32_0 : i32
    scf.if %2 {
      %cst_12 = arith.constant 0.000000e+00 : f32
      %14 = vector.broadcast %cst_12 : f32 to vector<32x128xf32>
      %c0_13 = arith.constant 0 : index
      %c0_14 = arith.constant 0 : index
      %15 = vector.load %arg8[%c0_13, %c0_14] : memref<32x128xf32, #tpu.memory_space<vmem>>, vector<32x128xf32>
      tpu.vector_store %arg8[%c0_13, %c0_14], %14 {strides = array<i32>} : memref<32x128xf32, #tpu.memory_space<vmem>>, vector<32x128xf32>,
    } else {
    }
    %c0 = arith.constant 0 : index
    %c0_1 = arith.constant 0 : index
    %3 = vector.load %arg8[%c0, %c0_1] : memref<32x128xf32, #tpu.memory_space<vmem>>, vector<32x128xf32>
    %c0_2 = arith.constant 0 : index
    %c0_3 = arith.constant 0 : index
    %c0_4 = arith.constant 0 : index
    %4 = vector.load %arg4[%c0_2, %c0_3, %c0_4] : memref<1x32x32xf32, #tpu.memory_space<vmem>>, vector<1x32x32xf32>
    %5 = vector.shape_cast %4 : vector<1x32x32xf32> to vector<32x32xf32>
    %c0_5 = arith.constant 0 : index
    %c0_6 = arith.constant 0 : index
    %c0_7 = arith.constant 0 : index
    %6 = vector.load %arg5[%c0_5, %c0_6, %c0_7] : memref<1x32x128xf32, #tpu.memory_space<vmem>>, vector<1x32x128xf32>
    %7 = vector.shape_cast %6 : vector<1x32x128xf32> to vector<32x128xf32>
    %cst = arith.constant dense<0.000000e+00> : vector<32x128xf32>
    %8 = tpu.matmul %5, %7, %cst {dimension_numbers = #tpu.dot_dimension_numbers<[1], [0], [0], [1], [0, 0, 1, 1], [], []>} : vector<32x32xf32>, vector<32x128xf32>, vector<32x128xf32> -> vector<32x128xf32>
    %9 = arith.addf %3, %8 : vector<32x128xf32>
    %c0_8 = arith.constant 0 : index
    %c0_9 = arith.constant 0 : index
    %10 = vector.load %arg8[%c0_8, %c0_9] : memref<32x128xf32, #tpu.memory_space<vmem>>, vector<32x128xf32>
    tpu.vector_store %arg8[%c0_8, %c0_9], %9 {strides = array<i32>} : memref<32x128xf32, #tpu.memory_space<vmem>>, vector<32x128xf32>,
    %c0_i32_10 = arith.constant 0 : i32
    %11 = arith.cmpi eq, %arg3, %c0_i32_10 : i32
    %12 = arith.extui %11 : i1 to i32
    %c0_i32_11 = arith.constant 0 : i32
    %13 = arith.cmpi ne, %12, %c0_i32_11 : i32
    scf.if %13 {
      %c0_12 = arith.constant 0 : index
      %c0_13 = arith.constant 0 : index
      %14 = vector.load %arg8[%c0_12, %c0_13] : memref<32x128xf32, #tpu.memory_space<vmem>>, vector<32x128xf32>
      %c0_14 = arith.constant 0 : index
      %c0_15 = arith.constant 0 : index
      %c0_16 = arith.constant 0 : index
      %15 = vector.load %arg6[%c0_14, %c0_15, %c0_16] : memref<1x1x128xf32, #tpu.memory_space<vmem>>, vector<1x1x128xf32>
      %16 = vector.shape_cast %15 : vector<1x1x128xf32> to vector<1x128xf32>
      %17 = vector.broadcast %16 : vector<1x128xf32> to vector<32x128xf32>
      %18 = arith.addf %14, %17 : vector<32x128xf32>
      %cst_17 = arith.constant 0.000000e+00 : f32
      %19 = vector.broadcast %cst_17 : f32 to vector<32x128xf32>
      %20 = arith.cmpf ogt, %18, %19 : vector<32x128xf32>
      %cst_18 = arith.constant 2.000000e-01 : f32
      %21 = vector.broadcast %cst_18 : f32 to vector<32x128xf32>
      %22 = arith.mulf %21, %18 : vector<32x128xf32>
      %23 = arith.select %20, %18, %22 : vector<32x128xi1>, vector<32x128xf32>
      %c0_19 = arith.constant 0 : index
      %c0_20 = arith.constant 0 : index
      %c0_21 = arith.constant 0 : index
      %24 = vector.load %arg7[%c0_19, %c0_20, %c0_21] : memref<1x32x128xf32, #tpu.memory_space<vmem>>, vector<1x32x128xf32>
      %25 = vector.shape_cast %24 : vector<1x32x128xf32> to vector<32x128xf32>
      %26 = vector.shape_cast %23 : vector<32x128xf32> to vector<1x32x128xf32>
      tpu.vector_store %arg7[%c0_19, %c0_20, %c0_21], %26 {strides = array<i32>} : memref<1x32x128xf32, #tpu.memory_space<vmem>>, vector<1x32x128xf32>,
    } else {
    }
    return
  }
  func.func @transform_0(%arg0: i32, %arg1: i32, %arg2: i32, %arg3: i32) -> (i32, i32, i32) {
    %c0_i32 = arith.constant 0 : i32
    return %arg0, %arg1, %arg3 : i32, i32, i32
  }
  func.func @transform_1(%arg0: i32, %arg1: i32, %arg2: i32, %arg3: i32) -> (i32, i32, i32) {
    %c0_i32 = arith.constant 0 : i32
    return %arg0, %arg3, %arg2 : i32, i32, i32
  }
  func.func @transform_2(%arg0: i32, %arg1: i32, %arg2: i32, %arg3: i32) -> (i32, i32, i32) {
    %c0_i32 = arith.constant 0 : i32
    %c0_i32_0 = arith.constant 0 : i32
    return %arg0, %c0_i32, %arg2 : i32, i32, i32
  }
  func.func @transform_3(%arg0: i32, %arg1: i32, %arg2: i32, %arg3: i32) -> (i32, i32, i32) {
    %c0_i32 = arith.constant 0 : i32
    return %arg0, %arg1, %arg2 : i32, i32, i32
  }
}

module attributes {stable_mosaic.version = 11 : i64} {
  func.func @_linear_lrelu_kernel(%arg0: i32, %arg1: i32, %arg2: i32, %arg3: i32, %arg4: memref<1x16x256xf32, #tpu.memory_space<vmem>>, %arg5: memref<1x256x128xf32, #tpu.memory_space<vmem>>, %arg6: memref<1x1x128xf32, #tpu.memory_space<vmem>>, %arg7: memref<1x16x128xf32, #tpu.memory_space<vmem>>, %arg8: memref<16x128xf32, #tpu.memory_space<vmem>>) attributes {dimension_semantics = [#tpu.dimension_semantics<parallel>, #tpu.dimension_semantics<parallel>, #tpu.dimension_semantics<parallel>, #tpu.dimension_semantics<arbitrary>], iteration_bounds = array<i64: 2, 1, 1, 1>, scalar_prefetch = 0 : i64, scratch_operands = 1 : i64, tpu.core_type = #tpu.core_type<tc>, window_params = [{transform_indices = @transform_0, window_bounds = array<i64: 1, 16, 256>}, {transform_indices = @transform_1, window_bounds = array<i64: 1, 256, 128>}, {transform_indices = @transform_2, window_bounds = array<i64: 1, 1, 128>}, {transform_indices = @transform_3, window_bounds = array<i64: 1, 16, 128>}]} {
    %c0_i32 = arith.constant 0 : i32
    %0 = arith.cmpi eq, %arg3, %c0_i32 : i32
    %1 = arith.extui %0 : i1 to i32
    %c0_i32_0 = arith.constant 0 : i32
    %2 = arith.cmpi ne, %1, %c0_i32_0 : i32
    scf.if %2 {
      %cst_12 = arith.constant 0.000000e+00 : f32
      %14 = vector.broadcast %cst_12 : f32 to vector<16x128xf32>
      %c0_13 = arith.constant 0 : index
      %c0_14 = arith.constant 0 : index
      %15 = vector.load %arg8[%c0_13, %c0_14] : memref<16x128xf32, #tpu.memory_space<vmem>>, vector<16x128xf32>
      tpu.vector_store %arg8[%c0_13, %c0_14], %14 {strides = array<i32>} : memref<16x128xf32, #tpu.memory_space<vmem>>, vector<16x128xf32>,
    } else {
    }
    %c0 = arith.constant 0 : index
    %c0_1 = arith.constant 0 : index
    %3 = vector.load %arg8[%c0, %c0_1] : memref<16x128xf32, #tpu.memory_space<vmem>>, vector<16x128xf32>
    %c0_2 = arith.constant 0 : index
    %c0_3 = arith.constant 0 : index
    %c0_4 = arith.constant 0 : index
    %4 = vector.load %arg4[%c0_2, %c0_3, %c0_4] : memref<1x16x256xf32, #tpu.memory_space<vmem>>, vector<1x16x256xf32>
    %5 = vector.shape_cast %4 : vector<1x16x256xf32> to vector<16x256xf32>
    %c0_5 = arith.constant 0 : index
    %c0_6 = arith.constant 0 : index
    %c0_7 = arith.constant 0 : index
    %6 = vector.load %arg5[%c0_5, %c0_6, %c0_7] : memref<1x256x128xf32, #tpu.memory_space<vmem>>, vector<1x256x128xf32>
    %7 = vector.shape_cast %6 : vector<1x256x128xf32> to vector<256x128xf32>
    %cst = arith.constant dense<0.000000e+00> : vector<16x128xf32>
    %8 = tpu.matmul %5, %7, %cst {dimension_numbers = #tpu.dot_dimension_numbers<[1], [0], [0], [1], [0, 0, 1, 1], [], []>} : vector<16x256xf32>, vector<256x128xf32>, vector<16x128xf32> -> vector<16x128xf32>
    %9 = arith.addf %3, %8 : vector<16x128xf32>
    %c0_8 = arith.constant 0 : index
    %c0_9 = arith.constant 0 : index
    %10 = vector.load %arg8[%c0_8, %c0_9] : memref<16x128xf32, #tpu.memory_space<vmem>>, vector<16x128xf32>
    tpu.vector_store %arg8[%c0_8, %c0_9], %9 {strides = array<i32>} : memref<16x128xf32, #tpu.memory_space<vmem>>, vector<16x128xf32>,
    %c0_i32_10 = arith.constant 0 : i32
    %11 = arith.cmpi eq, %arg3, %c0_i32_10 : i32
    %12 = arith.extui %11 : i1 to i32
    %c0_i32_11 = arith.constant 0 : i32
    %13 = arith.cmpi ne, %12, %c0_i32_11 : i32
    scf.if %13 {
      %c0_12 = arith.constant 0 : index
      %c0_13 = arith.constant 0 : index
      %14 = vector.load %arg8[%c0_12, %c0_13] : memref<16x128xf32, #tpu.memory_space<vmem>>, vector<16x128xf32>
      %c0_14 = arith.constant 0 : index
      %c0_15 = arith.constant 0 : index
      %c0_16 = arith.constant 0 : index
      %15 = vector.load %arg6[%c0_14, %c0_15, %c0_16] : memref<1x1x128xf32, #tpu.memory_space<vmem>>, vector<1x1x128xf32>
      %16 = vector.shape_cast %15 : vector<1x1x128xf32> to vector<1x128xf32>
      %17 = vector.broadcast %16 : vector<1x128xf32> to vector<16x128xf32>
      %18 = arith.addf %14, %17 : vector<16x128xf32>
      %cst_17 = arith.constant 0.000000e+00 : f32
      %19 = vector.broadcast %cst_17 : f32 to vector<16x128xf32>
      %20 = arith.cmpf ogt, %18, %19 : vector<16x128xf32>
      %cst_18 = arith.constant 2.000000e-01 : f32
      %21 = vector.broadcast %cst_18 : f32 to vector<16x128xf32>
      %22 = arith.mulf %21, %18 : vector<16x128xf32>
      %23 = arith.select %20, %18, %22 : vector<16x128xi1>, vector<16x128xf32>
      %c0_19 = arith.constant 0 : index
      %c0_20 = arith.constant 0 : index
      %c0_21 = arith.constant 0 : index
      %24 = vector.load %arg7[%c0_19, %c0_20, %c0_21] : memref<1x16x128xf32, #tpu.memory_space<vmem>>, vector<1x16x128xf32>
      %25 = vector.shape_cast %24 : vector<1x16x128xf32> to vector<16x128xf32>
      %26 = vector.shape_cast %23 : vector<16x128xf32> to vector<1x16x128xf32>
      tpu.vector_store %arg7[%c0_19, %c0_20, %c0_21], %26 {strides = array<i32>} : memref<1x16x128xf32, #tpu.memory_space<vmem>>, vector<1x16x128xf32>,
    } else {
    }
    return
  }
  func.func @transform_0(%arg0: i32, %arg1: i32, %arg2: i32, %arg3: i32) -> (i32, i32, i32) {
    %c0_i32 = arith.constant 0 : i32
    return %arg0, %arg1, %arg3 : i32, i32, i32
  }
  func.func @transform_1(%arg0: i32, %arg1: i32, %arg2: i32, %arg3: i32) -> (i32, i32, i32) {
    %c0_i32 = arith.constant 0 : i32
    return %arg0, %arg3, %arg2 : i32, i32, i32
  }
  func.func @transform_2(%arg0: i32, %arg1: i32, %arg2: i32, %arg3: i32) -> (i32, i32, i32) {
    %c0_i32 = arith.constant 0 : i32
    %c0_i32_0 = arith.constant 0 : i32
    return %arg0, %c0_i32, %arg2 : i32, i32, i32
  }
  func.func @transform_3(%arg0: i32, %arg1: i32, %arg2: i32, %arg3: i32) -> (i32, i32, i32) {
    %c0_i32 = arith.constant 0 : i32
    return %arg0, %arg1, %arg2 : i32, i32, i32
  }
}

</mosaic_0001>

<bundles_post_ra>
// kernel: mlp_g_forward.3
= control target key start
LH: loop header
LB: loop body
LE: loop exit
PB: predicated region body
PF: predicated region fallthrough
CT: control target
= control target key end

     0   :  { %8 = vsyncpa [#allocation4], 0  ;;  %s1059_s0 = inlined_call_operand.vmem [shape: f32[2,16,256], index: 0, kind: input, shape index: {}]   ;;  %s1060_s1 = inlined_call_operand.hbm [shape: f32[2,256,128], index: 1, kind: input, shape index: {}]   ;;  %s1061_s2 = inlined_call_operand.vmem [shape: f32[2,1,128], index: 2, kind: input, shape index: {}]   ;;  %s1062_s3 = inlined_call_operand.vmem [shape: f32[2,16,128], index: 3, kind: output, shape index: {}]  }
   0x1   :  { %10 = vsyncpa [#allocation4 + $0x1], 0  ;;  %s884_s12 = smov 0   ;;  %s886_s13 = smov 0  }
   0x2   :  { %s888_s14 = smov 0   ;;  %s890_s15 = smov 0  }
   0x3   :  { %s892_s16 = smov 0   ;;  %s894_s17 = smov 0  }
   0x4 LB: > { %s617_s18 = sadd.s32 4294967295, %s859_s17   ;;  %s42_s19 = sadd.s32 1, %s855_s16  ;;  %s859_s17 = sphi %s894_s17, %s16_s17   ;;  %s855_s16 = sphi %s892_s16, %s1070_s16   ;;  %s851_s15 = sphi %s890_s15, %s1069_s15   ;;  %s847_s14 = sphi %s888_s14, %s1068_s14   ;;  %s843_s13 = sphi %s886_s13, %s1067_s13   ;;  %s839_s12 = sphi %s884_s12, %s1066_s12  }
   0x5   : > { %p44_p0 = scmp.ge.s32.totalorder %s42_s19, 2  ;;  %s83_s20 = sadd.s32 1, %s847_s14 }
   0x6   : > { %p90_p1 = scmp.ne.s32.totalorder %s847_s14, %s843_s13  ;;  %p91_p2 = scmp.eq.s32.totalorder %s859_s17, 0 }
   0x7   : > { %s1072_s19 = smov (%p44_p0, %s42_s19), 0  ;;  %p96_p4 = scmp.ne.s32.totalorder %s843_s13, %s839_s12 }
   0x8   : > { %p920_p3 = por %p91_p2, %p90_p1  ;;  %s76_s22 = ssub.s32 %s855_s16, %s1072_s19 }
   0x9   : > { %p97_p5 = scmp.eq.s32.totalorder %s617_s18, 0  ;;  %p81_p6 = scmp.eq.s32.totalorder %s76_s22, 0 }
   0xa   : > { %p728_p8 = scmp.lt.s32.totalorder %s859_s17, 2  ;;  %s197_s25 = sand.u32 1, %s847_s14  }
   0xb   : > { %p927_p7 = por %p97_p5, %p96_p4  ;;  %s633_s26 = sshll.u32 %s855_s16, 12 }
   0xc   : > { %s933_s24 = scalar_select %p81_p6, %s847_s14, %s83_s20  }
   0xd   : > { %s621_s27 = sshll.u32 %s197_s25, 8  ;;  %s940_s30 = scalar_lea.hbm %s1060_s1, %s633_s26 }
   0xe   : > { %s201_s4 = scalar_lea.vmem [#allocation3], %s621_s27  ;;  %p944_p9 = pnand %p728_p8, %p920_p3 }
   0xf   : > { %s211_s5 = sshll.u32 %s201_s4, 4  ;;  %s950_s7 = scalar_lea.sflag [#allocation4], %s197_s25  ;;  %s948_s5 = int_to_ptr.vmem [resolvable:$true] %s211_s5 }
  0x10   : > { %s779_s8 = scalar_lea.hbm %s940_s30, 4096  ;;  %p781_p11 = pneg %p944_p9 }
  0x11   : > { %p780_p10 = scmp.ne.s32.totalorder %s940_s30, %s779_s8  ;;  %s784_s11 = scalar_lea.hbm %s1060_s1, 8192 }
  0x12   : > { %p785_p0 = scmp.lt.u32.totalorder %s940_s30, %s1060_s1  ;;  %p786_p1 = scmp.lt.u32.totalorder %s784_s11, %s779_s8 }
  0x13   : > { %p782_p12 = pnand %p781_p11, %p780_p10  ;;  %p788_p3 = scmp.lt.u32.totalorder %s779_s8, %s940_s30 }
  0x14   : > { %p787_p2 = por %p786_p1, %p785_p0 }
  0x15   : > { %p783_p13 = pneg %p782_p12 }
  0x16   : > { %p789_p4 = por %p788_p3, %p787_p2 }
  0x18   : > { %p790_p5 = pnand %p789_p4, %p783_p13 }
  0x1a   : > { %793 = shalt.err (!%p790_p5)
}
  0x1b   : > { %s794_s20 = scalar_lea.vmem %s948_s5, 4096  ;;  %s861_s21 = smov [#allocation3]  }
  0x1c   : > { %p795_p6 = scmp.ne.s32.totalorder %s948_s5, %s794_s20  ;;  %s799_s22 = sshll.u32 %s861_s21, 4  ;;  %s800_s22 = int_to_ptr.vmem [resolvable:$false] %s799_s22 }
  0x1d   : > { %s801_s25 = scalar_lea.vmem %s800_s22, 8192  ;;  %p802_p12 = scmp.lt.s32.totalorder %s948_s5, %s800_s22 }
  0x1e   : > { %p797_p8 = pnand %p795_p6, %p781_p11  ;;  %p803_p0 = scmp.lt.s32.totalorder %s801_s25, %s794_s20 }
  0x20   : > { %p798_p10 = pneg %p797_p8  ;;  %p804_p1 = por %p803_p0, %p802_p12 }
  0x22   : > { %p805_p2 = pnand %p804_p1, %p798_p10 }
  0x24   : > { %808 = shalt.err (!%p805_p2)
}
  0x25   : > { %s862_s26 = smov 128   ;;  %s863_s27 = smov 8  }
  0x26   : > { %727 = dma.hbm_to_vmem [thread:$0]  (!%p944_p9), %s940_s30, 4096, %s948_s5, %s950_s7, %s862_s26, %s862_s26, %s863_s27  }
  0x27   : > { %p624_p11 = scmp.ge.s32.totalorder %s859_s17, 1  ;;  %p228_p13 = scmp.lt.s32.totalorder %s859_s17, 3 }
  0x29   : > { %p229_p3 = pnand %p624_p11, %p228_p13 }
  0x2a   : > { %s234_s28 = sand.u32 (!%p229_p3), 1, %s843_s13  }
  0x2b   : > { %232 = sbr.rel (%p229_p3) target bundleno = 307 (0x133), region = 32  ;;  %s625_s29 = sshll.u32 (!%p229_p3), %s234_s28, 8 }
  0x2c   : > { %s235_s4 = scalar_lea.sflag (!%p229_p3), [#allocation4], %s234_s28  ;;  %s981_s8 = scalar_lea.vmem (!%p229_p3), [#allocation3], %s625_s29 }
  0x32   : > { %834 = dma.done.wait (%p927_p7), %s235_s4, 4096  }
  0x33   : > { %836 = vsyncadd (%p927_p7), %s235_s4, 4294963200  ;;  %p290_p9 = scmp.lt.s32.totalorder %s851_s15, 1  ;;  %v352_v0 = vld [vmem:[%s981_s8 + $0x80] sm:$0xff]  ;;  %v353_v1 = vld [vmem:[%s981_s8 + $0x88] sm:$0xff] }
  0x34   : > { %v336_v2 = vld [vmem:[%s981_s8] sm:$0xff]  ;;  %v674_v3 = vpack.c.bf16 %v353_v1, %v352_v0  ;;  %v337_v4 = vld [vmem:[%s981_s8 + $0x8] sm:$0xff]  ;;  %v354_v5 = vld [vmem:[%s981_s8 + $0x90] sm:$0xff] }
  0x35   : > { %s1074_s15 = smov (!%p290_p9, %s851_s15), 1  ;;  %v355_v6 = vld [vmem:[%s981_s8 + $0x98] sm:$0xff]  ;;  %v676_v7 = vpack.c.bf16 %v337_v4, %v336_v2  ;;  %v338_v9 = vld [vmem:[%s981_s8 + $0x10] sm:$0xff]  ;;  %v356_v11 = vld [vmem:[%s981_s8 + $0xa0] sm:$0xff] }
  0x36   : > { %v678_v8 = vpack.c.bf16 %v355_v6, %v354_v5  ;;  %v339_v10 = vld [vmem:[%s981_s8 + $0x18] sm:$0xff]  ;;  %675 = vmatprep.subr.bf16.mxu0 %v674_v3  ;;  %706 = vmatprep.subr.bf16.mxu1 %v674_v3  ;;  %v357_v12 = vld [vmem:[%s981_s8 + $0xa8] sm:$0xff]  ;;  %s634_s23 = sshll.u32 %s1074_s15, 5  ;;  %v340_v15 = vld [vmem:[%s981_s8 + $0x20] sm:$0xff]  ;;  %s310_s10 = scalar_lea.vmem %s1061_s2, %s1074_s15 }
  0x37   : > { %677 = vmatpush3.bf16.msra.mxu0 %v676_v7  ;;  %714 = vmatpush3.bf16.msra.mxu1 %v676_v7  ;;  %v680_v13 = vpack.c.bf16 %v339_v10, %v338_v9  ;;  %v682_v14 = vpack.c.bf16 %v357_v12, %v356_v11  ;;  %v341_v16 = vld [vmem:[%s981_s8 + $0x28] sm:$0xff]  ;;  %v358_v17 = vld [vmem:[%s981_s8 + $0xb0] sm:$0xff]  ;;  %v359_v18 = vld [vmem:[%s981_s8 + $0xb8] sm:$0xff]  ;;  %s1009_s6 = scalar_lea.vmem %s1059_s0, %s634_s23  ;;  %s635_s11 = sshll.u32 %s1074_s15, 4 }
  0x38   : > { %679 = vmatprep.subr.bf16.mxu0 %v678_v8  ;;  %707 = vmatprep.subr.bf16.mxu1 %v678_v8  ;;  %v684_v19 = vpack.c.bf16 %v341_v16, %v340_v15  ;;  %v686_v20 = vpack.c.bf16 %v359_v18, %v358_v17  ;;  %v342_v21 = vld [vmem:[%s981_s8 + $0x30] sm:$0xff]  ;;  %v343_v22 = vld [vmem:[%s981_s8 + $0x38] sm:$0xff]  ;;  %v360_v23 = vld [vmem:[%s981_s8 + $0xc0] sm:$0xff]  ;;  %s322_s20 = scalar_lea.vmem %s1062_s3, %s635_s11 }
  0x39   : > { %v361_v24 = vld [vmem:[%s981_s8 + $0xc8] sm:$0xff]  ;;  %v335_v26 = vld [vmem:[%s1009_s6 + $0x18] sm:$0xff]  ;;  %v688_v27 = vpack.c.bf16 %v343_v22, %v342_v21  ;;  %v344_v29 = vld [vmem:[%s981_s8 + $0x40] sm:$0xff] }
  0x3a   : > { %v333_v25 = vld [vmem:[%s1009_s6 + $0x8] sm:$0xff]  ;;  %v690_v28 = vpack.c.bf16 %v361_v24, %v360_v23  ;;  %v362_v31 = vld [vmem:[%s981_s8 + $0xd0] sm:$0xff]  ;;  %v363_v32 = vld [vmem:[%s981_s8 + $0xd8] sm:$0xff]  ;;  %437 = vmatprep.mubr.f32.mxu1 %v335_v26 }
  0x3b   : > { %681 = vmatpush3.bf16.msra.mxu0 %v680_v13  ;;  %715 = vmatpush3.bf16.msra.mxu1 %v680_v13  ;;  %v345_v30 = vld [vmem:[%s981_s8 + $0x48] sm:$0xff]  ;;  %v694_v34 = vpack.c.bf16 %v363_v32, %v362_v31  ;;  %v346_v35 = vld [vmem:[%s981_s8 + $0x50] sm:$0xff]  ;;  %v347_v36 = vld [vmem:[%s981_s8 + $0x58] sm:$0xff] }
  0x3c   : > { %683 = vmatprep.subr.bf16.mxu0 %v682_v14  ;;  %708 = vmatprep.subr.bf16.mxu1 %v682_v14  ;;  %v692_v33 = vpack.c.bf16 %v345_v30, %v344_v29  ;;  %v364_v37 = vld [vmem:[%s981_s8 + $0xe0] sm:$0xff]  ;;  %v365_v38 = vld [vmem:[%s981_s8 + $0xe8] sm:$0xff]  ;;  %v696_v39 = vpack.c.bf16 %v347_v36, %v346_v35  ;;  %v366_v43 = vld [vmem:[%s981_s8 + $0xf0] sm:$0xff] }
  0x3d   : > { %432 = vmatprep.mubr.f32.mxu0 %v333_v25  ;;  %v698_v40 = vpack.c.bf16 %v365_v38, %v364_v37  ;;  %v348_v41 = vld [vmem:[%s981_s8 + $0x60] sm:$0xff]  ;;  %v349_v42 = vld [vmem:[%s981_s8 + $0x68] sm:$0xff]  ;;  %v367_v44 = vld [vmem:[%s981_s8 + $0xf8] sm:$0xff] }
  0x3e   : > { %v700_v45 = vpack.c.bf16 %v349_v42, %v348_v41  ;;  %v702_v46 = vpack.c.bf16 %v367_v44, %v366_v43  ;;  %v350_v47 = vld [vmem:[%s981_s8 + $0x70] sm:$0xff]  ;;  %v351_v48 = vld [vmem:[%s981_s8 + $0x78] sm:$0xff]  ;;  %v332_v50 = vld [vmem:[%s1009_s6] sm:$0xff] }
  0x3f   : > { %685 = vmatpush3.bf16.msra.mxu0 %v684_v19  ;;  %716 = vmatpush3.bf16.msra.mxu1 %v684_v19  ;;  %v704_v49 = vpack.c.bf16 %v351_v48, %v350_v47  ;;  %v334_v51 = vld [vmem:[%s1009_s6 + $0x10] sm:$0xff]  ;;  %v630_v55 = vld [vmem:[%s310_s10] ss:$0 sm:$0xff] }
  0x40   : > { %687 = vmatprep.subr.bf16.mxu0 %v686_v20  ;;  %709 = vmatprep.subr.bf16.mxu1 %v686_v20 }
  0x43   : > { %689 = vmatpush3.bf16.msra.mxu0 %v688_v27  ;;  %717 = vmatpush3.bf16.msra.mxu1 %v688_v27 }
  0x44   : > { %691 = vmatprep.subr.bf16.mxu0 %v690_v28  ;;  %710 = vmatprep.subr.bf16.mxu1 %v690_v28 }
  0x47   : > { %693 = vmatpush3.bf16.msra.mxu0 %v692_v33  ;;  %718 = vmatpush3.bf16.msra.mxu1 %v692_v33 }
  0x48   : > { %695 = vmatprep.subr.bf16.mxu0 %v694_v34  ;;  %711 = vmatprep.subr.bf16.mxu1 %v694_v34 }
  0x4b   : > { %697 = vmatpush3.bf16.msra.mxu0 %v696_v39  ;;  %719 = vmatpush3.bf16.msra.mxu1 %v696_v39 }
  0x4c   : > { %699 = vmatprep.subr.bf16.mxu0 %v698_v40  ;;  %712 = vmatprep.subr.bf16.mxu1 %v698_v40 }
  0x4f   : > { %701 = vmatpush3.bf16.msra.mxu0 %v700_v45  ;;  %720 = vmatpush3.bf16.msra.mxu1 %v700_v45 }
  0x50   : > { %703 = vmatprep.subr.bf16.mxu0 %v702_v46  ;;  %713 = vmatprep.subr.bf16.mxu1 %v702_v46 }
  0x53   : > { %705 = vmatpush3.bf16.msra.mxu0 %v704_v49  ;;  %721 = vmatpush3.bf16.msra.mxu1 %v704_v49 }
  0x56   : > { %433 = vmatmul.mubr.f32.vlgmr.msra.gmra.mrb[0].mxu0 %v332_v50  ;;  %438 = vmatmul.mubr.f32.vlgmr.msra.gmra.mrb[0].mxu1 %v334_v51 }
 0x129   : > { %v668_v52 = vpop.f32.mrb[0].mxu0  ;;  %v671_v53 = vpop.f32.mrb[0].mxu1 }
 0x12a   : > { %v669_v54 = vpop.f32.mrb[1].mxu0  ;;  %v672_v56 = vpop.f32.mrb[1].mxu1 }
 0x12b   : > { %v670_v57 = vadd.f32 %v669_v54, %v668_v52  ;;  %v673_v58 = vadd.f32 %v672_v56, %v671_v53 }
 0x12d   : > { %v459_v59 = vadd.f32 %v670_v57, %v630_v55  ;;  %v460_v60 = vadd.f32 %v673_v58, %v630_v55 }
 0x12f   : > { %vm461_vm0 = vcmp.gt.f32.partialorder %v459_v59, 0.0  ;;  %v463_v61 = vmul.f32 0.2, %v459_v59  ;;  %vm462_vm1 = vcmp.gt.f32.partialorder %v460_v60, 0.0  ;;  %v464_v62 = vmul.f32 0.2, %v460_v60 }
 0x131   : > { %v465_v63 = vsel %vm461_vm0, %v459_v59, %v463_v61  ;;  %v466_v0 = vsel %vm462_vm1, %v460_v60, %v464_v62 }
 0x132   : > { %467 = vst [vmem:[%s322_s20] sm:$0xff] %v465_v63  ;;  %468 = vst [vmem:[%s322_s20 + $0x8] sm:$0xff] %v466_v0 }
 0x133 PF: > { %s16_s17 = sadd.s32 1, %s859_s17   ;;  %s1066_s12 = smov %s843_s13 }
 0x134   : > { %p13_p7 = scmp.ge.s32.totalorder %s16_s17, 4   ;;  %s1067_s13 = smov %s847_s14 }
 0x135   : > { %s1068_s14 = smov %s933_s24  ;;  %s1069_s15 = smov %s855_s16 }
 0x136   : > { %s1070_s16 = smov %s1072_s19  ;;  %15 = sbr.rel (!%p13_p7) target bundleno = 4 (0x4), region = 86 }
 0x13d   :  { %505 = vsyncpa [#allocation4], 1 }
 0x13e   :  { %507 = vsyncpa [#allocation4 + $0x1], 1 }

// kernel: mlp_g_forward.2
= control target key start
LH: loop header
LB: loop body
LE: loop exit
PB: predicated region body
PF: predicated region fallthrough
CT: control target
= control target key end

     0   :  { %s816_s12 = smov 0   ;;  %s818_s13 = smov 0   ;;  %s913_s0 = inlined_call_operand.vmem [shape: f32[1,32,32], index: 0, kind: input, shape index: {}]   ;;  %s914_s1 = inlined_call_operand.vmem [shape: f32[1,32,256], index: 1, kind: input, shape index: {}]   ;;  %s915_s2 = inlined_call_operand.vmem [shape: f32[1,1,256], index: 2, kind: input, shape index: {}]   ;;  %s916_s3 = inlined_call_operand.vmem [shape: f32[1,32,256], index: 3, kind: output, shape index: {}]  }
   0x1   :  { %s820_s14 = smov 0   ;;  %s822_s15 = smov 0  }
   0x2   :  { %s824_s16 = smov 0  }
   0x3 LB: > { %s31_s17 = sadd.s32 1, %s790_s15  ;;  %s663_s18 = sadd.s32 4294967295, %s794_s16   ;;  %s794_s16 = sphi %s824_s16, %s13_s16   ;;  %s790_s15 = sphi %s822_s15, %s921_s15   ;;  %s786_s14 = sphi %s820_s14, %s920_s14   ;;  %s782_s13 = sphi %s818_s13, %s919_s13   ;;  %s778_s12 = sphi %s816_s12, %s918_s12  }
   0x4   : > { %p33_p0 = scmp.ge.s32.totalorder %s31_s17, 2  ;;  %p87_p1 = scmp.ne.s32.totalorder %s782_s13, %s778_s12 }
   0x5   : > { %p88_p2 = scmp.eq.s32.totalorder %s794_s16, 0  ;;  %p149_p4 = scmp.eq.s32.totalorder %s663_s18, 1 }
   0x6   : > { %s923_s17 = smov (%p33_p0, %s31_s17), 0  ;;  %s80_s20 = sadd.s32 1, %s782_s13 }
   0x7   : > { %p89_p3 = por %p88_p2, %p87_p1  ;;  %s76_s19 = ssub.s32 %s790_s15, %s923_s17 }
   0x8   : > { %p78_p5 = scmp.eq.s32.totalorder %s76_s19, 0  ;;  %p851_p6 = por %p149_p4, %p87_p1 }
   0x9   : > { %p667_p7 = scmp.ge.s32.totalorder %s794_s16, 2 }
   0xa   : > { %s856_s22 = scalar_select %p78_p5, %s782_s13, %s80_s20  }
   0xb   : > { %187 = sbr.rel (%p667_p7) target bundleno = 25 (0x19), region = 20 }
  0x12   : > { %190 = sbr.rel (!%p89_p3) target bundleno = 25 (0x19), region = 24  ;;  %s192_s23 = sand.u32 (%p89_p3), 1, %s782_s13  }
  0x13   : > { %s669_s24 = sshll.u32 (%p89_p3), %s790_s15, 3  ;;  %s668_s25 = sshll.u32 (%p89_p3), %s192_s23, 5 }
  0x14   : > { %s201_s28 = scalar_lea.vmem (%p89_p3), %s914_s1, %s669_s24  ;;  %s194_s29 = scalar_lea.vmem (%p89_p3), [#allocation3], %s668_s25 }
  0x15   : > { %v235_v0 = vld [vmem:[%s201_s28] sm:$0xff] (%p89_p3)  ;;  %v237_v1 = vld [vmem:[%s201_s28 + $0x10] sm:$0xff] (%p89_p3) }
  0x16   : > { %v239_v2 = vld [vmem:[%s201_s28 + $0x20] sm:$0xff] (%p89_p3)  ;;  %236 = vst [vmem:[%s194_s29] sm:$0xff] (%p89_p3), %v235_v0  ;;  %238 = vst [vmem:[%s194_s29 + $0x8] sm:$0xff] (%p89_p3), %v237_v1  ;;  %v241_v3 = vld [vmem:[%s201_s28 + $0x30] sm:$0xff] (%p89_p3) }
  0x17   : > { %240 = vst [vmem:[%s194_s29 + $0x10] sm:$0xff] (%p89_p3), %v239_v2  ;;  %242 = vst [vmem:[%s194_s29 + $0x18] sm:$0xff] (%p89_p3), %v241_v3 }
  0x19 PF: > { %p670_p8 = scmp.ge.s32.totalorder %s794_s16, 1  ;;  %p257_p9 = scmp.lt.s32.totalorder %s794_s16, 3 }
  0x1b   : > { %p258_p10 = pnand %p670_p8, %p257_p9 }
  0x1c   : > { %s264_s30 = sand.u32 (!%p258_p10), 1, %s778_s12   ;;  %v339_v4 = vld [vmem:[%s913_s0] sm:$0xff] (!%p258_p10)  ;;  %vm347_vm0 = vcmask (!%p258_p10), 261120   ;;  %v341_v5 = vld [vmem:[%s913_s0 + $0x10] sm:$0xff] (!%p258_p10)  ;;  %v340_v12 = vld [vmem:[%s913_s0 + $0x8] sm:$0xff] (!%p258_p10)  ;;  %p321_p11 = scmp.lt.s32.totalorder (!%p258_p10), %s786_s14, 1 }
  0x1d   : > { %261 = sbr.rel (%p258_p10) target bundleno = 269 (0x10d), region = 66  ;;  %s873_s8 = sshll.u32 (!%p258_p10), %s264_s30, 5  ;;  %698 = vmatprep.mubr.msk.f32.mxu0 (!%p258_p10), %vm347_vm0, %v339_v4  ;;  %701 = vmatprep.mubr.msk.f32.mxu1 (!%p258_p10), %vm347_vm0, %v341_v5  ;;  %v342_v13 = vld [vmem:[%s913_s0 + $0x18] sm:$0xff] (!%p258_p10) }
  0x1e   : > { %s266_s9 = scalar_lea.vmem (!%p258_p10), [#allocation3], %s873_s8  ;;  %s304_s25 = scalar_lea.vmem (!%p258_p10), [#allocation4], %s873_s8 }
  0x1f   : > { %v343_v6 = vld [vmem:[%s266_s9] sm:$0xff] (!%p258_p10)  ;;  %v344_v7 = vld [vmem:[%s266_s9 + $0x8] sm:$0xff] (!%p258_p10)  ;;  %v345_v8 = vld [vmem:[%s266_s9 + $0x10] sm:$0xff] (!%p258_p10) }
  0x20   : > { %v704_v9 = vpack.c.bf16 (!%p258_p10), %v344_v7, %v343_v6  ;;  %v346_v10 = vld [vmem:[%s266_s9 + $0x18] sm:$0xff] (!%p258_p10) }
  0x21   : > { %v708_v11 = vpack.c.bf16 (!%p258_p10), %v346_v10, %v345_v8 }
  0x22   : > { %705 = vmatprep.subr.bf16.mxu0 (!%p258_p10), %v704_v9  ;;  %712 = vmatprep.subr.bf16.mxu1 (!%p258_p10), %v704_v9 }
  0x23   : > { %707 = vmatpush3.bf16.msra.mxu0 (!%p258_p10), %v704_v9  ;;  %714 = vmatpush3.bf16.msra.mxu1 (!%p258_p10), %v704_v9 }
  0x24   : > { %709 = vmatprep.subr.bf16.mxu0 %v708_v11  ;;  %713 = vmatprep.subr.bf16.mxu1 %v708_v11  ;;  %s322_s19 = scalar_select %p321_p11, %s786_s14, 1 }
  0x25   : > { %s679_s26 = sshll.u32 (%p851_p6), %s786_s14, 3 }
  0x26   : > { %s325_s24 = scalar_lea.vmem %s915_s2, %s322_s19  ;;  %s500_s29 = scalar_lea.vmem (%p851_p6), %s916_s3, %s679_s26 }
  0x27   : > { %711 = vmatpush3.bf16.msra.mxu0 %v708_v11  ;;  %715 = vmatpush3.bf16.msra.mxu1 %v708_v11  ;;  %v677_v14 = vld [vmem:[%s325_s24] ss:$0 sm:$0xff] }
  0x2a   : > { %699 = vmatmul.mubr.msk.f32.vlgmr.msra.gmra.mrb[0].mxu0 %vm347_vm0, %v340_v12  ;;  %702 = vmatmul.mubr.msk.f32.vlgmr.msra.gmra.mrb[0].mxu1 %vm347_vm0, %v342_v13 }
  0xfd   : > { %v700_v15 = vpop.f32.mrb[0].mxu0  ;;  %v703_v16 = vpop.f32.mrb[0].mxu1 }
  0xfe   : > { %v468_v17 = vadd.f32 %v700_v15, %v677_v14  ;;  %v470_v18 = vadd.f32 %v703_v16, %v677_v14  ;;  %v426_v19 = vpop.f32.mrb[1].mxu0  ;;  %v436_v20 = vpop.f32.mrb[1].mxu1  ;;  %493 = sbr.rel (!%p851_p6) target bundleno = 269 (0x10d), region = 82 }
  0xff   : > { %v467_v21 = vadd.f32 %v677_v14, %v426_v19  ;;  %v469_v22 = vadd.f32 %v677_v14, %v436_v20 }
 0x100   : > { %vm472_vm1 = vcmp.gt.f32.partialorder %v468_v17, 0.0  ;;  %v476_v23 = vmul.f32 0.2, %v468_v17  ;;  %vm474_vm2 = vcmp.gt.f32.partialorder %v470_v18, 0.0  ;;  %v478_v24 = vmul.f32 0.2, %v470_v18 }
 0x101   : > { %vm471_vm3 = vcmp.gt.f32.partialorder %v467_v21, 0.0  ;;  %v475_v25 = vmul.f32 0.2, %v467_v21  ;;  %vm473_vm4 = vcmp.gt.f32.partialorder %v469_v22, 0.0  ;;  %v477_v26 = vmul.f32 0.2, %v469_v22 }
 0x102   : > { %v480_v27 = vsel %vm472_vm1, %v468_v17, %v476_v23  ;;  %v482_v28 = vsel %vm474_vm2, %v470_v18, %v478_v24 }
 0x103   : > { %484 = vst [vmem:[%s304_s25 + $0x8] sm:$0xff] %v480_v27  ;;  %486 = vst [vmem:[%s304_s25 + $0x18] sm:$0xff] %v482_v28  ;;  %v479_v29 = vsel %vm471_vm3, %v467_v21, %v475_v25  ;;  %v481_v30 = vsel %vm473_vm4, %v469_v22, %v477_v26 }
 0x104   : > { %483 = vst [vmem:[%s304_s25] sm:$0xff] %v479_v29  ;;  %485 = vst [vmem:[%s304_s25 + $0x10] sm:$0xff] %v481_v30 }
 0x10a   : > { %v536_v32 = vld [vmem:[%s304_s25 + $0x8] sm:$0xff]  ;;  %v540_v34 = vld [vmem:[%s304_s25 + $0x18] sm:$0xff] }
 0x10b   : > { %v534_v31 = vld [vmem:[%s304_s25] sm:$0xff]  ;;  %v538_v33 = vld [vmem:[%s304_s25 + $0x10] sm:$0xff]  ;;  %537 = vst [vmem:[%s500_s29 + $0x10] sm:$0xff] %v536_v32  ;;  %541 = vst [vmem:[%s500_s29 + $0x30] sm:$0xff] %v540_v34 }
 0x10c   : > { %535 = vst [vmem:[%s500_s29] sm:$0xff] %v534_v31  ;;  %539 = vst [vmem:[%s500_s29 + $0x20] sm:$0xff] %v538_v33 }
 0x10d PF: > { %s13_s16 = sadd.s32 1, %s794_s16   ;;  %s918_s12 = smov %s782_s13 }
 0x10e   : > { %p10_p12 = scmp.ge.s32.totalorder %s13_s16, 4   ;;  %s919_s13 = smov %s856_s22 }
 0x10f   : > { %s920_s14 = smov %s790_s15  ;;  %s921_s15 = smov %s923_s17 }
 0x110   :  { %12 = sbr.rel (!%p10_p12) target bundleno = 3 (0x3), region = 157 }

</bundles_post_ra>
